<compile_context>
chip_gen: v5e
topology: v5e:2x2
jax: 0.10.0
libtpu: 0.0.40
codegen_flags: <defaults>
</compile_context>

<pallas_src>
import functools

import jax
import jax.numpy as jnp
from jax.experimental import pallas as pl
from jax.experimental.pallas import tpu as pltpu

LATENT = 256
HIDDEN = 128
T_DIM = 64


def _stream_sum_kernel(ctx_ref, psum_ref, acc_ref, *, n_rows, tn, bpc, has_tail):
    """Per-core running row-sum of ctx, folded into a (1, 8, LATENT) f32 acc."""
    c = pl.program_id(0)            # TensorCore split ("parallel")
    i = pl.program_id(1)            # streaming / reduction axis ("arbitrary")
    b = c * bpc + i                 # virtual global row-block index

    @pl.when(i == 0)
    def _():
        acc_ref[...] = jnp.zeros_like(acc_ref)

    # Stream narrow (e.g. bf16) and upcast in-kernel; no-op for f32 input.
    x = ctx_ref[...].astype(jnp.float32)              # (tn, LATENT)

    def fold(v):
        # Pure-VPU fold of sublane groups into (1, 8, LATENT); the single
        # cross-sublane (XLU) reduce happens once, in the combine kernel.
        return jnp.sum(v.reshape(tn // 8, 8, LATENT), axis=0)[None]

    if not has_tail:
        # Static: every block fully in range -> no mask code emitted at all.
        acc_ref[...] += fold(x)
    else:
        full = (b + 1) * tn <= n_rows

        @pl.when(full)
        def _():                                       # hot path: unmasked
            acc_ref[...] += fold(x)

        @pl.when(jnp.logical_not(full))
        def _():                                       # edge / virtual block only
            row = jax.lax.broadcasted_iota(jnp.int32, (tn, 1), 0) + b * tn
            acc_ref[...] += fold(jnp.where(row < n_rows, x, 0.0))

    @pl.when(i == pl.num_programs(1) - 1)
    def _():
        psum_ref[...] = acc_ref[...]


def _combine_mlp_kernel(psum_ref, w1_ref, b1_ref, w2_ref, b2_ref, out_ref, *, n_rows):
    """Combine per-core partial sums -> mean, then Linear-ReLU-Linear."""
    s = jnp.sum(psum_ref[...], axis=0)                           # (8, LATENT)
    mean = jnp.sum(s, axis=0, keepdims=True) * (1.0 / n_rows)    # (1, LATENT)
    h = jnp.dot(mean, w1_ref[...], preferred_element_type=jnp.float32) + b1_ref[...]
    h = jnp.maximum(h, 0.0)
    out = jnp.dot(h, w2_ref[...], preferred_element_type=jnp.float32) + b2_ref[...]
    out_ref[...] = out.astype(out_ref.dtype)


def task_embed(ctx, w1, b1, w2, b2, *, block_rows=8192):
    n, latent = ctx.shape
    assert latent == LATENT

    itemsize = jnp.dtype(ctx.dtype).itemsize
    sub = 8 * max(1, 4 // itemsize)            # sublane packing: 8 f32, 16 bf16
    block_rows = max(sub, (block_rows // sub) * sub)   # enforce multiple of sub
    tn = min(block_rows, pl.cdiv(n, sub) * sub)
    assert tn % sub == 0 and tn % 8 == 0 and tn >= 8

    n_blocks = pl.cdiv(n, tn)
    # Shard the row stream across 2 TensorCores (v7x) whenever there is more
    # than one block; on 1-TC chips (v5e/v6e) the axis just serializes.
    num_split = 2 if n_blocks > 1 else 1
    bpc = pl.cdiv(n_blocks, num_split)         # row blocks per core
    # Masking needed iff the last real block is partial, or the rectangular
    # (num_split, bpc) grid contains virtual blocks past the end of ctx.
    has_tail = (n % tn != 0) or (n_blocks % num_split != 0)

    def ctx_map(c, i):
        # Clamp fully-virtual blocks onto the last real block (their rows are
        # masked to zero in the kernel, so the data read there is irrelevant).
        return (jnp.minimum(c * bpc + i, n_blocks - 1), 0)

    # double-buffered ctx block + acc/out blocks + headroom (per core)
    vmem_bytes = 2 * tn * LATENT * itemsize + 4 * 8 * LATENT * 4 + (4 << 20)

    cost = pl.CostEstimate(
        flops=n * LATENT,
        transcendentals=0,
        bytes_accessed=n * LATENT * itemsize + num_split * 8 * LATENT * 4,
    )

    psum = pl.pallas_call(
        functools.partial(_stream_sum_kernel, n_rows=n, tn=tn, bpc=bpc,
                          has_tail=has_tail),
        out_shape=jax.ShapeDtypeStruct((num_split, 8, LATENT), jnp.float32),
        grid_spec=pltpu.PrefetchScalarGridSpec(
            num_scalar_prefetch=0,
            grid=(num_split, bpc),
            in_specs=[pl.BlockSpec((tn, LATENT), ctx_map)],
            out_specs=pl.BlockSpec((1, 8, LATENT), lambda c, i: (c, 0, 0)),
            scratch_shapes=[pltpu.VMEM((1, 8, LATENT), jnp.float32)],
        ),
        compiler_params=pltpu.CompilerParams(
            dimension_semantics=("parallel", "arbitrary"),
            vmem_limit_bytes=vmem_bytes,
        ),
        cost_estimate=cost,
    )(ctx)

    # Pass 2: combine the tiny partial sums and run the 2-layer MLP.
    return pl.pallas_call(
        functools.partial(_combine_mlp_kernel, n_rows=n),
        out_shape=jax.ShapeDtypeStruct((1, T_DIM), jnp.float32),
        grid=(1,),
        in_specs=[
            pl.BlockSpec((num_split, 8, LATENT), lambda i: (0, 0, 0)),
            pl.BlockSpec((LATENT, HIDDEN), lambda i: (0, 0)),
            pl.BlockSpec((1, HIDDEN), lambda i: (0, 0)),
            pl.BlockSpec((HIDDEN, T_DIM), lambda i: (0, 0)),
            pl.BlockSpec((1, T_DIM), lambda i: (0, 0)),
        ],
        out_specs=pl.BlockSpec((1, T_DIM), lambda i: (0, 0)),
    )(psum, w1, b1, w2, b2)


def reference(ctx, w1, b1, w2, b2):
    m = jnp.mean(ctx.astype(jnp.float32), axis=0, keepdims=True)
    h = jnp.maximum(m @ w1 + b1, 0.0)
    return h @ w2 + b2


if __name__ == "__main__":
    key = jax.random.PRNGKey(0)
    k_ctx, k_w1, k_b1, k_w2, k_b2 = jax.random.split(key, 5)

    # Deterministic params (shapes match nn.Linear(256,128), nn.Linear(128,64)),
    # stored as (in, out); biases kept 2D (1, out) for a TPU-friendly layout.
    w1 = jax.random.normal(k_w1, (LATENT, HIDDEN), dtype=jnp.float32) * (1.0 / LATENT ** 0.5)
    b1 = jax.random.normal(k_b1, (1, HIDDEN), dtype=jnp.float32) * 0.01
    w2 = jax.random.normal(k_w2, (HIDDEN, T_DIM), dtype=jnp.float32) * (1.0 / HIDDEN ** 0.5)
    b2 = jax.random.normal(k_b2, (1, T_DIM), dtype=jnp.float32) * 0.01

    def check(ctx, **kw):
        out = jax.block_until_ready(task_embed(ctx, w1, b1, w2, b2, **kw))
        ref = reference(ctx, w1, b1, w2, b2)
        assert out.shape == (1, T_DIM), out.shape
        err = float(jnp.max(jnp.abs(out - ref)))
        assert jnp.allclose(out, ref, atol=1e-4, rtol=1e-4), err

    # 1) tiny single-block path (N=8).
    check(jax.random.normal(k_ctx, (8, LATENT), dtype=jnp.float32))

    # 2) multi-block + 2-way core split + partial tail block + one virtual block.
    check(jax.random.normal(jax.random.PRNGKey(1), (20, LATENT), dtype=jnp.float32),
          block_rows=8)

    # 3) moderate streaming path: 5 blocks of 64 rows over the 2-way split,
    #    with masked tail and a fully virtual block (exercises the gated mask).
    check(jax.random.normal(jax.random.PRNGKey(2), (300, LATENT), dtype=jnp.float32),
          block_rows=64)

    # 4) bf16 ctx streamed narrow and upcast in-kernel (single partial block).
    check(jax.random.normal(jax.random.PRNGKey(3), (300, LATENT),
                            dtype=jnp.float32).astype(jnp.bfloat16))

    print("KERNEL_OK")
</pallas_src>

<mosaic_0001>
module attributes {stable_mosaic.version = 11 : i64} {
  func.func @_stream_sum_kernel(%arg0: i32, %arg1: i32, %arg2: memref<8x256xf32, #tpu.memory_space<vmem>>, %arg3: memref<1x8x256xf32, #tpu.memory_space<vmem>>, %arg4: memref<1x8x256xf32, #tpu.memory_space<vmem>>) attributes {dimension_semantics = [#tpu.dimension_semantics<parallel>, #tpu.dimension_semantics<arbitrary>], iteration_bounds = array<i64: 1, 1>, scalar_prefetch = 0 : i64, scratch_operands = 1 : i64, tpu.core_type = #tpu.core_type<tc>, window_params = [{transform_indices = @transform_0, window_bounds = array<i64: 8, 256>}, {transform_indices = @transform_1, window_bounds = array<i64: 1, 8, 256>}]} {
    %c0_i32 = arith.constant 0 : i32
    %0 = arith.cmpi eq, %arg1, %c0_i32 : i32
    %1 = arith.extui %0 : i1 to i32
    %c0_i32_0 = arith.constant 0 : i32
    %2 = arith.cmpi ne, %1, %c0_i32_0 : i32
    scf.if %2 {
      %cst_10 = arith.constant 0.000000e+00 : f32
      %13 = vector.broadcast %cst_10 : f32 to vector<1x8x256xf32>
      %c0_11 = arith.constant 0 : index
      %c0_12 = arith.constant 0 : index
      %c0_13 = arith.constant 0 : index
      %14 = vector.load %arg4[%c0_11, %c0_12, %c0_13] : memref<1x8x256xf32, #tpu.memory_space<vmem>>, vector<1x8x256xf32>
      tpu.vector_store %arg4[%c0_11, %c0_12, %c0_13], %13 {strides = array<i32>} : memref<1x8x256xf32, #tpu.memory_space<vmem>>, vector<1x8x256xf32>,
    } else {
    }
    %c0 = arith.constant 0 : index
    %c0_1 = arith.constant 0 : index
    %3 = vector.load %arg2[%c0, %c0_1] : memref<8x256xf32, #tpu.memory_space<vmem>>, vector<8x256xf32>
    %c0_2 = arith.constant 0 : index
    %c0_3 = arith.constant 0 : index
    %c0_4 = arith.constant 0 : index
    %4 = vector.load %arg4[%c0_2, %c0_3, %c0_4] : memref<1x8x256xf32, #tpu.memory_space<vmem>>, vector<1x8x256xf32>
    %5 = vector.shape_cast %3 : vector<8x256xf32> to vector<1x8x256xf32>
    %cst = arith.constant dense<0.000000e+00> : vector<8x256xf32>
    %6 = vector.multi_reduction <add>, %5, %cst [0] : vector<1x8x256xf32> to vector<8x256xf32>
    %7 = vector.shape_cast %6 : vector<8x256xf32> to vector<1x8x256xf32>
    %8 = arith.addf %4, %7 : vector<1x8x256xf32>
    %c0_5 = arith.constant 0 : index
    %c0_6 = arith.constant 0 : index
    %c0_7 = arith.constant 0 : index
    %9 = vector.load %arg4[%c0_5, %c0_6, %c0_7] : memref<1x8x256xf32, #tpu.memory_space<vmem>>, vector<1x8x256xf32>
    tpu.vector_store %arg4[%c0_5, %c0_6, %c0_7], %8 {strides = array<i32>} : memref<1x8x256xf32, #tpu.memory_space<vmem>>, vector<1x8x256xf32>,
    %c0_i32_8 = arith.constant 0 : i32
    %10 = arith.cmpi eq, %arg1, %c0_i32_8 : i32
    %11 = arith.extui %10 : i1 to i32
    %c0_i32_9 = arith.constant 0 : i32
    %12 = arith.cmpi ne, %11, %c0_i32_9 : i32
    scf.if %12 {
      %c0_10 = arith.constant 0 : index
      %c0_11 = arith.constant 0 : index
      %c0_12 = arith.constant 0 : index
      %13 = vector.load %arg4[%c0_10, %c0_11, %c0_12] : memref<1x8x256xf32, #tpu.memory_space<vmem>>, vector<1x8x256xf32>
      %c0_13 = arith.constant 0 : index
      %c0_14 = arith.constant 0 : index
      %c0_15 = arith.constant 0 : index
      %14 = vector.load %arg3[%c0_13, %c0_14, %c0_15] : memref<1x8x256xf32, #tpu.memory_space<vmem>>, vector<1x8x256xf32>
      tpu.vector_store %arg3[%c0_13, %c0_14, %c0_15], %13 {strides = array<i32>} : memref<1x8x256xf32, #tpu.memory_space<vmem>>, vector<1x8x256xf32>,
    } else {
    }
    return
  }
  func.func @transform_0(%arg0: i32, %arg1: i32) -> (i32, i32) {
    %c1_i32 = arith.constant 1 : i32
    %0 = arith.muli %arg0, %c1_i32 : i32
    %1 = arith.addi %0, %arg1 : i32
    %c0_i32 = arith.constant 0 : i32
    %2 = arith.minsi %1, %c0_i32 : i32
    %c0_i32_0 = arith.constant 0 : i32
    %c0_i32_1 = arith.constant 0 : i32
    return %2, %c0_i32_0 : i32, i32
  }
  func.func @transform_1(%arg0: i32, %arg1: i32) -> (i32, i32, i32) {
    %c0_i32 = arith.constant 0 : i32
    %c0_i32_0 = arith.constant 0 : i32
    %c0_i32_1 = arith.constant 0 : i32
    return %arg0, %c0_i32, %c0_i32_0 : i32, i32, i32
  }
}

</mosaic_0001>

<bundles_post_ra>
// kernel: tpu_custom_call.1
= control target key start
LH: loop header
LB: loop body
LE: loop exit
PB: predicated region body
PF: predicated region fallthrough
CT: control target
= control target key end

     0   :  { %6 = vsyncpa [#allocation4], 0  ;;  %s146_s0 = inlined_call_operand.hbm [shape: f32[8,256], index: 0, kind: input, shape index: {}]   ;;  %s147_s1 = inlined_call_operand.hbm [shape: f32[1,8,256], index: 1, kind: output, shape index: {}]  }
   0x1   :  { %7 = vsyncpa [#allocation5], 0  ;;  %s19_s8 = sshll.u32 %s146_s0, 4  ;;  %s128_s9 = smov [#allocation3]   ;;  %s20_s8 = int_to_ptr.hbm [resolvable:$true] %s19_s8 }
   0x2   :  { %s21_s10 = sshll.u32 %s128_s9, 4  ;;  %s22_s10 = int_to_ptr.vmem [resolvable:$true] %s21_s10 }
   0x3   :  { %24 = dma.hbm_to_vmem [thread:$0]  %s20_s8, 256, %s22_s10, [#allocation4]  }
   0x4   :  { %124 = dma.done.wait [#allocation4], 256  }
   0x5   :  { %125 = vsyncadd [#allocation4], 4294967040  ;;  %s129_s11 = smov [#allocation6]   ;;  %s62_s15 = sshll.u32 %s147_s1, 4  ;;  %v38_v0 = vld [vmem:[#allocation3] sm:$0xff]  ;;  %v39_v1 = vld [vmem:[#allocation3 + $0x8] sm:$0xff]  ;;  %s63_s15 = int_to_ptr.hbm [resolvable:$true] %s62_s15 }
   0x6   :  { %s60_s12 = sshll.u32 %s129_s11, 4  ;;  %53 = vst [vmem:[#allocation6] sm:$0xff] %v38_v0  ;;  %s61_s12 = int_to_ptr.vmem [resolvable:$true] %s60_s12 }
   0x7   :  { %54 = vst [vmem:[#allocation6 + $0x8] sm:$0xff] %v39_v1 }
   0x8   :  { %65 = dma.vmem_to_hbm [thread:$0]  %s61_s12, 256, %s63_s15, [#allocation5]  }
   0x9   :  { %126 = dma.done.wait [#allocation5], 256  }
   0xa   :  { %127 = vsyncadd [#allocation5], 4294967040 }
   0xb   :  { %70 = vsyncpa [#allocation4], 1 }
   0xc   :  { %71 = vsyncpa [#allocation5], 1 }

</bundles_post_ra>
